<compile_context>
chip_gen: v7x
topology: tpu7x:2x2x1
jax: 0.10.0
libtpu: 0.0.40
codegen_flags: <defaults>
</compile_context>

<pallas_src>
import functools

import jax
import jax.numpy as jnp
from jax.experimental import pallas as pl
from jax.experimental.pallas import tpu as pltpu


def _round_up(x, m):
    return -(-x // m) * m


def _physical_vmem_bytes():
    """Per-TensorCore physical VMEM; conservative (v7x) fallback if unknown."""
    try:
        info = pltpu.get_tpu_info()
        for attr in ("vmem_capacity_bytes", "vmem_bytes", "vmem_size_bytes"):
            v = getattr(info, attr, None)
            if v:
                return int(v)
    except Exception:
        pass
    return 64 << 20


def _block_spec(shape, index_map, n_bufs=2):
    if n_bufs == 1:
        # Constant-index block: single-buffer it so the pipeline does not
        # allocate a redundant second VMEM copy (big win for resident [D, M]).
        return pl.BlockSpec(shape, index_map, pipeline_mode=pl.Buffered(1))
    return pl.BlockSpec(shape, index_map)


def _supcon_kernel(anchor_ref, contrast_t_ref, alab_ref, clab_ref, out_ref,
                   m_sc, denom_sc, npos_sc, plog_sc, *,
                   n_anchor, m_contrast, scale):
    """One (row tile i, contrast tile j) step with online log-sum-exp.

    anchor_ref:     [TN, D]  anchor rows (1/temperature pre-folded), block (i, 0)
    contrast_t_ref: [D, TM]  pre-transposed contrast features, block (0, j)
    alab_ref:       [TN, 1]  int32 anchor labels, block (i, 0)
    clab_ref:       [1, TM]  int32 contrast labels, block (0, j)
    out_ref:        [TN, 1]  f32 per-anchor loss, block (i, 0), written at last j
    m_sc/denom_sc/npos_sc/plog_sc: [TN, 1] f32 running max / denominator /
                    positive-pair count / sum of positive raw logits.
    """
    i = pl.program_id(0)
    j = pl.program_id(1)
    tn = anchor_ref.shape[0]
    tm = contrast_t_ref.shape[1]

    @pl.when(j == 0)
    def _():
        m_sc[...] = jnp.full_like(m_sc, -jnp.inf)
        denom_sc[...] = jnp.zeros_like(denom_sc)
        npos_sc[...] = jnp.zeros_like(npos_sc)
        plog_sc[...] = jnp.zeros_like(plog_sc)

    # [TN, D] x [D, TM] on the MXU; bf16 inputs, f32 accumulation.
    logits = jnp.dot(anchor_ref[...], contrast_t_ref[...],
                     preferred_element_type=jnp.float32)

    # Masks built on-chip from iota + tiny label vectors (no [N, M] HBM mask).
    row_g = jax.lax.broadcasted_iota(jnp.int32, (tn, tm), 0) + i * tn
    col_g = jax.lax.broadcasted_iota(jnp.int32, (tn, tm), 1) + j * tm
    col_valid = col_g < m_contrast                 # exclude padded contrast cols
    not_self = (row_g != col_g) & col_valid        # logits_mask of the reference
    pos = (alab_ref[...] == clab_ref[...]) & not_self & (row_g < n_anchor)

    # Online (flash-style) masked log-sum-exp over the contrast axis.
    # (Max includes self, denominator excludes self — matches the reference;
    #  the final formula is shift-invariant in the max anyway.)
    tile_max = jnp.max(jnp.where(col_valid, logits, -jnp.inf),
                       axis=1, keepdims=True)
    m_old = m_sc[...]
    m_new = jnp.maximum(m_old, tile_max)
    # exp runs on the EUP slot; masked columns contribute exactly 0 (exp(-inf)).
    # (A bf16 exp would relieve the EUP further on v6e/v7x at D<=128, but is
    #  skipped here to keep the denominator accurate.)
    ex = jnp.exp(jnp.where(not_self, logits, -jnp.inf) - m_new)
    denom_sc[...] = jnp.exp(m_old - m_new) * denom_sc[...] \
        + jnp.sum(ex, axis=1, keepdims=True)
    m_sc[...] = m_new

    # sum(mask*log_prob) = sum(mask*raw) - (max + log(denom)) * sum(mask),
    # so only [TN, 1] vectors are accumulated; log_prob is never materialized.
    pos_f = pos.astype(jnp.float32)
    npos_sc[...] += jnp.sum(pos_f, axis=1, keepdims=True)
    plog_sc[...] += jnp.sum(jnp.where(pos, logits, 0.0), axis=1, keepdims=True)

    @pl.when(j == pl.num_programs(1) - 1)
    def _():
        lse = m_sc[...] + jnp.log(denom_sc[...])
        mean_log_prob_pos = (plog_sc[...] - lse * npos_sc[...]) \
            / (npos_sc[...] + 1e-7)
        out_ref[...] = scale * mean_log_prob_pos


def supcon_loss(features, labels=None, mask=None, weights=None,
                temperature=0.07, contrast_mode='all', base_temperature=0.07,
                block_rows=None, block_cols=None, compute_dtype=jnp.bfloat16):
    """JAX/Pallas port of SupConLoss.forward."""
    if features.ndim < 3:
        raise ValueError('`features` needs to be [bsz, n_views, ...]')
    if features.ndim > 3:
        features = features.reshape(features.shape[0], features.shape[1], -1)
    bsz, n_views, D = features.shape

    if labels is not None and mask is not None:
        raise ValueError('Cannot define both `labels` and `mask`')
    if mask is not None:
        # TODO(synk): explicit (possibly asymmetric) [bsz, bsz] `mask` argument
        # would need an in-kernel gather of the small mask; only the `labels`
        # and SimCLR paths are implemented.
        raise NotImplementedError('explicit `mask` not supported; pass `labels`')
    if labels is None:
        labels = jnp.arange(bsz, dtype=jnp.int32)    # SimCLR: identity mask
    else:
        labels = jnp.asarray(labels).reshape(-1)
        if labels.shape[0] != bsz:
            raise ValueError('Num of labels does not match num of features')
    labels = labels.astype(jnp.int32)

    contrast_count = n_views
    # torch.cat(torch.unbind(features, dim=1), dim=0): rows ordered (view, sample).
    contrast_feature = jnp.transpose(features, (1, 0, 2)).reshape(n_views * bsz, D)

    if contrast_mode == 'one':
        anchor_feature = features[:, 0]
        anchor_count = 1
    elif contrast_mode == 'all':
        anchor_feature = contrast_feature
        anchor_count = contrast_count
    else:
        raise ValueError(f'Unknown mode: {contrast_mode}')

    N = bsz * anchor_count
    M = bsz * contrast_count

    anchor_labels = jnp.tile(labels, anchor_count).reshape(N, 1)
    contrast_labels = jnp.tile(labels, contrast_count).reshape(1, M)

    # Fold 1/temperature into the anchors (f32 math), then cast both operands
    # to the compute dtype (bf16 by default: native MXU dtype, half the DMA
    # and VMEM footprint). MXU accumulation stays f32 in the kernel.
    compute_dtype = jnp.dtype(compute_dtype)
    anchor_q = (anchor_feature.astype(jnp.float32)
                * (1.0 / float(temperature))).astype(compute_dtype)
    contrast_t = contrast_feature.astype(compute_dtype).T       # [D, M]

    feat_bytes = compute_dtype.itemsize
    sub = {1: 32, 2: 16, 4: 8}.get(feat_bytes, 16)   # dtype sublane multiple

    phys_vmem = _physical_vmem_bytes()
    # Leave pipeline/compiler headroom under the physical per-TC limit:
    # ~96 MiB on v5e/v6e (128 MiB), ~48 MiB on v7x (64 MiB).
    vmem_cap = max(16 << 20, int(0.75 * phys_vmem))

    # --- contrast-column (M) tiling: 256-aligned tiles, padded columns masked.
    if block_cols is not None:
        tm = _round_up(int(block_cols), 256)
    else:
        nc = -(-_round_up(M, 256) // 2048)           # number of column tiles
        tm = _round_up(-(-M // nc), 256)
    m_pad = _round_up(M, tm)
    num_col_tiles = m_pad // tm

    # --- anchor-row (N) tiling: VMEM-budget-driven TN selection.
    def _vmem_estimate(tn_, tm_, a_bufs, c_bufs):
        return (6 * tn_ * tm_ * 4                    # live [TN, TM] f32 temporaries
                + c_bufs * D * tm_ * feat_bytes      # contrast^T tile buffers
                + a_bufs * tn_ * D * feat_bytes      # anchor tile buffers
                + c_bufs * tm_ * 4                   # contrast-label buffers
                + a_bufs * tn_ * 4                   # anchor-label buffers
                + 2 * tn_ * 4                        # output block
                + 4 * tn_ * 4)                       # [TN, 1] f32 accumulators

    if block_rows is not None:
        tn = _round_up(int(block_rows), sub)
    else:
        tn = 256
        while tn > 2 * sub and _vmem_estimate(tn, tm, 2, 2) > vmem_cap:
            tn //= 2
        tn = max(sub, _round_up(tn, sub))

    if N <= tn:
        if N >= 32 and N >= 2 * sub:
            # Split into >=2 row tiles so both v7x TensorCores get work.
            tn = _round_up(-(-N // 2), sub)
        else:
            tn = _round_up(N, sub)
    n_pad = _round_up(N, tn)
    num_row_tiles = n_pad // tn

    # --- padding (padded rows/cols are masked out in-kernel).
    if n_pad != N:
        anchor_q = jnp.pad(anchor_q, ((0, n_pad - N), (0, 0)))
        anchor_labels = jnp.pad(anchor_labels, ((0, n_pad - N), (0, 0)),
                                constant_values=-1)
    if m_pad != M:
        contrast_t = jnp.pad(contrast_t, ((0, 0), (0, m_pad - M)))
        contrast_labels = jnp.pad(contrast_labels, ((0, 0), (0, m_pad - M)),
                                  constant_values=-2)

    # Honest VMEM accounting (includes multi-buffered inputs), gen-aware cap.
    a_bufs = 1 if num_row_tiles == 1 else 2
    c_bufs = 1 if num_col_tiles == 1 else 2
    vmem_need = _vmem_estimate(tn, tm, a_bufs, c_bufs)
    vmem_limit = int(min(max(16 << 20, int(1.25 * vmem_need)), vmem_cap))

    kernel = functools.partial(
        _supcon_kernel,
        n_anchor=N,
        m_contrast=M,
        scale=-(float(temperature) / float(base_temperature)),
    )

    in_specs = [
        _block_spec((tn, D), lambda i, j: (i, 0), a_bufs),   # anchor rows
        _block_spec((D, tm), lambda i, j: (0, j), c_bufs),   # contrast^T tile
        _block_spec((tn, 1), lambda i, j: (i, 0), a_bufs),   # anchor labels
        _block_spec((1, tm), lambda i, j: (0, j), c_bufs),   # contrast labels
    ]
    # TODO(synk): a lane-dense (num_tiles, tn) output would remove the masked
    # [TN, 1] partial stores at finalize; kept [TN, 1] to avoid an in-kernel
    # sublane->lane relayout (finalize-only, negligible cost).
    out_specs = pl.BlockSpec((tn, 1), lambda i, j: (i, 0))

    per_anchor = pl.pallas_call(
        kernel,
        out_shape=jax.ShapeDtypeStruct((n_pad, 1), jnp.float32),
        grid=(num_row_tiles, num_col_tiles),
        in_specs=in_specs,
        out_specs=out_specs,
        scratch_shapes=[
            pltpu.VMEM((tn, 1), jnp.float32),   # running row max
            pltpu.VMEM((tn, 1), jnp.float32),   # running denominator
            pltpu.VMEM((tn, 1), jnp.float32),   # positive-pair count
            pltpu.VMEM((tn, 1), jnp.float32),   # sum of positive raw logits
        ],
        compiler_params=pltpu.CompilerParams(
            dimension_semantics=("parallel", "arbitrary"),
            vmem_limit_bytes=vmem_limit),
    )(anchor_q, contrast_t, anchor_labels, contrast_labels)

    per = per_anchor[:N, 0].reshape(anchor_count, bsz)
    if weights is not None:
        weights = jnp.asarray(weights, jnp.float32)
        return (per * weights).sum() / weights.sum()
    return per.mean()


def _supcon_loss_ref(features, labels=None, weights=None, temperature=0.07,
                     contrast_mode='all', base_temperature=0.07):
    """Pure-JAX reference mirroring the PyTorch module (for validation)."""
    bsz, n_views, D = features.shape
    if labels is None:
        mask = jnp.eye(bsz, dtype=jnp.float32)
    else:
        labels = jnp.asarray(labels).reshape(-1, 1)
        mask = (labels == labels.T).astype(jnp.float32)
    contrast = jnp.concatenate([features[:, v] for v in range(n_views)], axis=0)
    contrast_count = n_views
    if contrast_mode == 'one':
        anchor = features[:, 0]
        anchor_count = 1
    else:
        anchor = contrast
        anchor_count = contrast_count
    N = bsz * anchor_count
    M = bsz * contrast_count
    adc = (anchor @ contrast.T) / temperature
    logits = adc - jnp.max(adc, axis=1, keepdims=True)
    mask_big = jnp.tile(mask, (anchor_count, contrast_count))
    lmask = jnp.ones((N, M)).at[jnp.arange(N), jnp.arange(N)].set(0.0)
    mask_big = mask_big * lmask
    exp_logits = jnp.exp(logits) * lmask
    log_prob = logits - jnp.log(exp_logits.sum(1, keepdims=True))
    mlpp = (mask_big * log_prob).sum(1) / (mask_big.sum(1) + 1e-7)
    loss = (-(temperature / base_temperature) * mlpp).reshape(anchor_count, bsz)
    if weights is not None:
        weights = jnp.asarray(weights, jnp.float32)
        return (loss * weights).sum() / weights.sum()
    return loss.mean()


if __name__ == "__main__":
    key = jax.random.PRNGKey(0)
    k1, k2, k3, k4 = jax.random.split(key, 4)

    # --- Test 1: small, single tile; exact (f32) and fast (bf16) paths. ---
    bsz, n_views, D = 8, 2, 32
    feats = jax.random.normal(k1, (bsz, n_views, D), dtype=jnp.float32)
    feats = feats / jnp.linalg.norm(feats, axis=-1, keepdims=True)
    labels = jax.random.randint(k2, (bsz,), 0, 4)

    ref = _supcon_loss_ref(feats, labels)
    out = jax.block_until_ready(
        supcon_loss(feats, labels=labels, compute_dtype=jnp.float32))
    assert jnp.allclose(out, ref, rtol=2e-3, atol=2e-3), (out, ref)
    out = jax.block_until_ready(supcon_loss(feats, labels=labels))
    assert jnp.allclose(out, ref, rtol=5e-2, atol=5e-2), (out, ref)

    # --- Test 2: multi row/col tiles, padded N and M, weights + SimCLR. ---
    bsz, n_views, D = 200, 2, 64
    feats = jax.random.normal(k3, (bsz, n_views, D), dtype=jnp.float32)
    feats = feats / jnp.linalg.norm(feats, axis=-1, keepdims=True)
    labels = jax.random.randint(k4, (bsz,), 0, 10)
    weights = jnp.linspace(0.5, 1.5, bsz)

    ref = _supcon_loss_ref(feats, labels, weights=weights)
    out = jax.block_until_ready(
        supcon_loss(feats, labels=labels, weights=weights, block_cols=256))
    assert jnp.allclose(out, ref, rtol=5e-2, atol=5e-2), (out, ref)

    ref = _supcon_loss_ref(feats, None)                       # SimCLR path
    out = jax.block_until_ready(supcon_loss(feats, block_cols=256))
    assert jnp.allclose(out, ref, rtol=5e-2, atol=5e-2), (out, ref)

    # --- Test 3: contrast_mode='one' (rectangular logits, padded rows). ---
    ref = _supcon_loss_ref(feats, labels, contrast_mode='one')
    out = jax.block_until_ready(
        supcon_loss(feats, labels=labels, contrast_mode='one'))
    assert jnp.allclose(out, ref, rtol=5e-2, atol=5e-2), (out, ref)

    print("KERNEL_OK")
</pallas_src>

<mosaic_0001>
module attributes {stable_mosaic.version = 11 : i64} {
  func.func @_supcon_kernel(%arg0: i32, %arg1: i32, %arg2: memref<16x32xf32, #tpu.memory_space<vmem>>, %arg3: memref<32x256xf32, #tpu.memory_space<vmem>>, %arg4: memref<16x1xi32, #tpu.memory_space<vmem>>, %arg5: memref<1x256xi32, #tpu.memory_space<vmem>>, %arg6: memref<16x1xf32, #tpu.memory_space<vmem>>, %arg7: memref<16x1xf32, #tpu.memory_space<vmem>>, %arg8: memref<16x1xf32, #tpu.memory_space<vmem>>, %arg9: memref<16x1xf32, #tpu.memory_space<vmem>>, %arg10: memref<16x1xf32, #tpu.memory_space<vmem>>) attributes {dimension_semantics = [#tpu.dimension_semantics<parallel>, #tpu.dimension_semantics<arbitrary>], iteration_bounds = array<i64: 1, 1>, scalar_prefetch = 0 : i64, scratch_operands = 4 : i64, tpu.core_type = #tpu.core_type<tc>, window_params = [{pipeline_mode = #tpu.pipeline_mode<synchronous>, transform_indices = @transform_0, window_bounds = array<i64: 16, 32>}, {pipeline_mode = #tpu.pipeline_mode<synchronous>, transform_indices = @transform_1, window_bounds = array<i64: 32, 256>}, {pipeline_mode = #tpu.pipeline_mode<synchronous>, transform_indices = @transform_2, window_bounds = array<i64: 16, 1>}, {pipeline_mode = #tpu.pipeline_mode<synchronous>, transform_indices = @transform_3, window_bounds = array<i64: 1, 256>}, {transform_indices = @transform_4, window_bounds = array<i64: 16, 1>}]} {
    %c0_i32 = arith.constant 0 : i32
    %0 = arith.cmpi eq, %arg1, %c0_i32 : i32
    %1 = arith.extui %0 : i1 to i32
    %c0_i32_0 = arith.constant 0 : i32
    %2 = arith.cmpi ne, %1, %c0_i32_0 : i32
    scf.if %2 {
      %cst_35 = arith.constant 0xFF800000 : f32
      %64 = vector.broadcast %cst_35 : f32 to vector<16x1xf32>
      %c0_36 = arith.constant 0 : index
      %c0_37 = arith.constant 0 : index
      %65 = vector.load %arg7[%c0_36, %c0_37] : memref<16x1xf32, #tpu.memory_space<vmem>>, vector<16x1xf32>
      tpu.vector_store %arg7[%c0_36, %c0_37], %64 {strides = array<i32>} : memref<16x1xf32, #tpu.memory_space<vmem>>, vector<16x1xf32>,
      %cst_38 = arith.constant 0.000000e+00 : f32
      %66 = vector.broadcast %cst_38 : f32 to vector<16x1xf32>
      %c0_39 = arith.constant 0 : index
      %c0_40 = arith.constant 0 : index
      %67 = vector.load %arg8[%c0_39, %c0_40] : memref<16x1xf32, #tpu.memory_space<vmem>>, vector<16x1xf32>
      tpu.vector_store %arg8[%c0_39, %c0_40], %66 {strides = array<i32>} : memref<16x1xf32, #tpu.memory_space<vmem>>, vector<16x1xf32>,
      %cst_41 = arith.constant 0.000000e+00 : f32
      %68 = vector.broadcast %cst_41 : f32 to vector<16x1xf32>
      %c0_42 = arith.constant 0 : index
      %c0_43 = arith.constant 0 : index
      %69 = vector.load %arg9[%c0_42, %c0_43] : memref<16x1xf32, #tpu.memory_space<vmem>>, vector<16x1xf32>
      tpu.vector_store %arg9[%c0_42, %c0_43], %68 {strides = array<i32>} : memref<16x1xf32, #tpu.memory_space<vmem>>, vector<16x1xf32>,
      %cst_44 = arith.constant 0.000000e+00 : f32
      %70 = vector.broadcast %cst_44 : f32 to vector<16x1xf32>
      %c0_45 = arith.constant 0 : index
      %c0_46 = arith.constant 0 : index
      %71 = vector.load %arg10[%c0_45, %c0_46] : memref<16x1xf32, #tpu.memory_space<vmem>>, vector<16x1xf32>
      tpu.vector_store %arg10[%c0_45, %c0_46], %70 {strides = array<i32>} : memref<16x1xf32, #tpu.memory_space<vmem>>, vector<16x1xf32>,
    } else {
    }
    %c0 = arith.constant 0 : index
    %c0_1 = arith.constant 0 : index
    %3 = vector.load %arg2[%c0, %c0_1] : memref<16x32xf32, #tpu.memory_space<vmem>>, vector<16x32xf32>
    %c0_2 = arith.constant 0 : index
    %c0_3 = arith.constant 0 : index
    %4 = vector.load %arg3[%c0_2, %c0_3] : memref<32x256xf32, #tpu.memory_space<vmem>>, vector<32x256xf32>
    %cst = arith.constant dense<0.000000e+00> : vector<16x256xf32>
    %5 = tpu.matmul %3, %4, %cst {dimension_numbers = #tpu.dot_dimension_numbers<[1], [0], [0], [1], [0, 0, 1, 1], [], []>} : vector<16x32xf32>, vector<32x256xf32>, vector<16x256xf32> -> vector<16x256xf32>
    %6 = tpu.iota {dimensions = array<i32: 0>} : vector<16x256xi32>
    %c16_i32 = arith.constant 16 : i32
    %7 = arith.muli %arg0, %c16_i32 : i32
    %8 = vector.broadcast %7 : i32 to vector<16x256xi32>
    %9 = arith.addi %6, %8 : vector<16x256xi32>
    %10 = tpu.iota {dimensions = array<i32: 1>} : vector<16x256xi32>
    %c256_i32 = arith.constant 256 : i32
    %11 = arith.muli %arg1, %c256_i32 : i32
    %12 = vector.broadcast %11 : i32 to vector<16x256xi32>
    %13 = arith.addi %10, %12 : vector<16x256xi32>
    %c16_i32_4 = arith.constant 16 : i32
    %14 = vector.broadcast %c16_i32_4 : i32 to vector<16x256xi32>
    %15 = arith.cmpi slt, %13, %14 : vector<16x256xi32>
    %16 = arith.cmpi ne, %9, %13 : vector<16x256xi32>
    %17 = arith.andi %16, %15 : vector<16x256xi1>
    %c0_5 = arith.constant 0 : index
    %c0_6 = arith.constant 0 : index
    %18 = vector.load %arg4[%c0_5, %c0_6] : memref<16x1xi32, #tpu.memory_space<vmem>>, vector<16x1xi32>
    %c0_7 = arith.constant 0 : index
    %c0_8 = arith.constant 0 : index
    %19 = vector.load %arg5[%c0_7, %c0_8] : memref<1x256xi32, #tpu.memory_space<vmem>>, vector<1x256xi32>
    %20 = vector.broadcast %18 : vector<16x1xi32> to vector<16x256xi32>
    %21 = vector.broadcast %19 : vector<1x256xi32> to vector<16x256xi32>
    %22 = arith.cmpi eq, %20, %21 : vector<16x256xi32>
    %23 = arith.andi %22, %17 : vector<16x256xi1>
    %c16_i32_9 = arith.constant 16 : i32
    %24 = vector.broadcast %c16_i32_9 : i32 to vector<16x256xi32>
    %25 = arith.cmpi slt, %9, %24 : vector<16x256xi32>
    %26 = arith.andi %23, %25 : vector<16x256xi1>
    %cst_10 = arith.constant 0xFF800000 : f32
    %27 = vector.broadcast %cst_10 : f32 to vector<16x256xf32>
    %28 = arith.select %15, %5, %27 : vector<16x256xi1>, vector<16x256xf32>
    %cst_11 = arith.constant dense<0xFF800000> : vector<16xf32>
    %29 = vector.multi_reduction <maximumf>, %28, %cst_11 [1] : vector<16x256xf32> to vector<16xf32>
    %30 = vector.shape_cast %29 : vector<16xf32> to vector<16x1xf32>
    %c0_12 = arith.constant 0 : index
    %c0_13 = arith.constant 0 : index
    %31 = vector.load %arg7[%c0_12, %c0_13] : memref<16x1xf32, #tpu.memory_space<vmem>>, vector<16x1xf32>
    %32 = arith.maximumf %31, %30 : vector<16x1xf32>
    %cst_14 = arith.constant 0xFF800000 : f32
    %33 = vector.broadcast %cst_14 : f32 to vector<16x256xf32>
    %34 = arith.select %17, %5, %33 : vector<16x256xi1>, vector<16x256xf32>
    %35 = vector.broadcast %32 : vector<16x1xf32> to vector<16x256xf32>
    %36 = arith.subf %34, %35 : vector<16x256xf32>
    %37 = math.exp %36 : vector<16x256xf32>
    %38 = arith.subf %31, %32 : vector<16x1xf32>
    %39 = math.exp %38 : vector<16x1xf32>
    %c0_15 = arith.constant 0 : index
    %c0_16 = arith.constant 0 : index
    %40 = vector.load %arg8[%c0_15, %c0_16] : memref<16x1xf32, #tpu.memory_space<vmem>>, vector<16x1xf32>
    %41 = arith.mulf %39, %40 : vector<16x1xf32>
    %cst_17 = arith.constant dense<0.000000e+00> : vector<16xf32>
    %42 = vector.multi_reduction <add>, %37, %cst_17 [1] : vector<16x256xf32> to vector<16xf32>
    %43 = vector.shape_cast %42 : vector<16xf32> to vector<16x1xf32>
    %44 = arith.addf %41, %43 : vector<16x1xf32>
    %c0_18 = arith.constant 0 : index
    %c0_19 = arith.constant 0 : index
    %45 = vector.load %arg8[%c0_18, %c0_19] : memref<16x1xf32, #tpu.memory_space<vmem>>, vector<16x1xf32>
    tpu.vector_store %arg8[%c0_18, %c0_19], %44 {strides = array<i32>} : memref<16x1xf32, #tpu.memory_space<vmem>>, vector<16x1xf32>,
    %c0_20 = arith.constant 0 : index
    %c0_21 = arith.constant 0 : index
    %46 = vector.load %arg7[%c0_20, %c0_21] : memref<16x1xf32, #tpu.memory_space<vmem>>, vector<16x1xf32>
    tpu.vector_store %arg7[%c0_20, %c0_21], %32 {strides = array<i32>} : memref<16x1xf32, #tpu.memory_space<vmem>>, vector<16x1xf32>,
    %47 = arith.extui %26 : vector<16x256xi1> to vector<16x256xi32>
    %48 = arith.sitofp %47 : vector<16x256xi32> to vector<16x256xf32>
    %c0_22 = arith.constant 0 : index
    %c0_23 = arith.constant 0 : index
    %49 = vector.load %arg9[%c0_22, %c0_23] : memref<16x1xf32, #tpu.memory_space<vmem>>, vector<16x1xf32>
    %cst_24 = arith.constant dense<0.000000e+00> : vector<16xf32>
    %50 = vector.multi_reduction <add>, %48, %cst_24 [1] : vector<16x256xf32> to vector<16xf32>
    %51 = vector.shape_cast %50 : vector<16xf32> to vector<16x1xf32>
    %52 = arith.addf %49, %51 : vector<16x1xf32>
    %c0_25 = arith.constant 0 : index
    %c0_26 = arith.constant 0 : index
    %53 = vector.load %arg9[%c0_25, %c0_26] : memref<16x1xf32, #tpu.memory_space<vmem>>, vector<16x1xf32>
    tpu.vector_store %arg9[%c0_25, %c0_26], %52 {strides = array<i32>} : memref<16x1xf32, #tpu.memory_space<vmem>>, vector<16x1xf32>,
    %c0_27 = arith.constant 0 : index
    %c0_28 = arith.constant 0 : index
    %54 = vector.load %arg10[%c0_27, %c0_28] : memref<16x1xf32, #tpu.memory_space<vmem>>, vector<16x1xf32>
    %cst_29 = arith.constant 0.000000e+00 : f32
    %55 = vector.broadcast %cst_29 : f32 to vector<16x256xf32>
    %56 = arith.select %26, %5, %55 : vector<16x256xi1>, vector<16x256xf32>
    %cst_30 = arith.constant dense<0.000000e+00> : vector<16xf32>
    %57 = vector.multi_reduction <add>, %56, %cst_30 [1] : vector<16x256xf32> to vector<16xf32>
    %58 = vector.shape_cast %57 : vector<16xf32> to vector<16x1xf32>
    %59 = arith.addf %54, %58 : vector<16x1xf32>
    %c0_31 = arith.constant 0 : index
    %c0_32 = arith.constant 0 : index
    %60 = vector.load %arg10[%c0_31, %c0_32] : memref<16x1xf32, #tpu.memory_space<vmem>>, vector<16x1xf32>
    tpu.vector_store %arg10[%c0_31, %c0_32], %59 {strides = array<i32>} : memref<16x1xf32, #tpu.memory_space<vmem>>, vector<16x1xf32>,
    %c0_i32_33 = arith.constant 0 : i32
    %61 = arith.cmpi eq, %arg1, %c0_i32_33 : i32
    %62 = arith.extui %61 : i1 to i32
    %c0_i32_34 = arith.constant 0 : i32
    %63 = arith.cmpi ne, %62, %c0_i32_34 : i32
    scf.if %63 {
      %c0_35 = arith.constant 0 : index
      %c0_36 = arith.constant 0 : index
      %64 = vector.load %arg7[%c0_35, %c0_36] : memref<16x1xf32, #tpu.memory_space<vmem>>, vector<16x1xf32>
      %c0_37 = arith.constant 0 : index
      %c0_38 = arith.constant 0 : index
      %65 = vector.load %arg8[%c0_37, %c0_38] : memref<16x1xf32, #tpu.memory_space<vmem>>, vector<16x1xf32>
      %66 = math.log %65 : vector<16x1xf32>
      %67 = arith.addf %64, %66 : vector<16x1xf32>
      %c0_39 = arith.constant 0 : index
      %c0_40 = arith.constant 0 : index
      %68 = vector.load %arg10[%c0_39, %c0_40] : memref<16x1xf32, #tpu.memory_space<vmem>>, vector<16x1xf32>
      %c0_41 = arith.constant 0 : index
      %c0_42 = arith.constant 0 : index
      %69 = vector.load %arg9[%c0_41, %c0_42] : memref<16x1xf32, #tpu.memory_space<vmem>>, vector<16x1xf32>
      %70 = arith.mulf %67, %69 : vector<16x1xf32>
      %71 = arith.subf %68, %70 : vector<16x1xf32>
      %c0_43 = arith.constant 0 : index
      %c0_44 = arith.constant 0 : index
      %72 = vector.load %arg9[%c0_43, %c0_44] : memref<16x1xf32, #tpu.memory_space<vmem>>, vector<16x1xf32>
      %cst_45 = arith.constant 1.000000e-07 : f32
      %73 = vector.broadcast %cst_45 : f32 to vector<16x1xf32>
      %74 = arith.addf %72, %73 : vector<16x1xf32>
      %75 = arith.divf %71, %74 : vector<16x1xf32>
      %cst_46 = arith.constant -1.000000e+00 : f32
      %76 = vector.broadcast %cst_46 : f32 to vector<16x1xf32>
      %77 = arith.mulf %76, %75 : vector<16x1xf32>
      %c0_47 = arith.constant 0 : index
      %c0_48 = arith.constant 0 : index
      %78 = vector.load %arg6[%c0_47, %c0_48] : memref<16x1xf32, #tpu.memory_space<vmem>>, vector<16x1xf32>
      tpu.vector_store %arg6[%c0_47, %c0_48], %77 {strides = array<i32>} : memref<16x1xf32, #tpu.memory_space<vmem>>, vector<16x1xf32>,
    } else {
    }
    return
  }
  func.func @transform_0(%arg0: i32, %arg1: i32) -> (i32, i32) {
    %c0_i32 = arith.constant 0 : i32
    %c0_i32_0 = arith.constant 0 : i32
    return %arg0, %c0_i32 : i32, i32
  }
  func.func @transform_1(%arg0: i32, %arg1: i32) -> (i32, i32) {
    %c0_i32 = arith.constant 0 : i32
    %c0_i32_0 = arith.constant 0 : i32
    return %c0_i32, %arg1 : i32, i32
  }
  func.func @transform_2(%arg0: i32, %arg1: i32) -> (i32, i32) {
    %c0_i32 = arith.constant 0 : i32
    %c0_i32_0 = arith.constant 0 : i32
    return %arg0, %c0_i32 : i32, i32
  }
  func.func @transform_3(%arg0: i32, %arg1: i32) -> (i32, i32) {
    %c0_i32 = arith.constant 0 : i32
    %c0_i32_0 = arith.constant 0 : i32
    return %c0_i32, %arg1 : i32, i32
  }
  func.func @transform_4(%arg0: i32, %arg1: i32) -> (i32, i32) {
    %c0_i32 = arith.constant 0 : i32
    %c0_i32_0 = arith.constant 0 : i32
    return %arg0, %c0_i32 : i32, i32
  }
}

</mosaic_0001>

<bundles_post_ra>
// kernel: tpu_custom_call.1
= control target key start
LH: loop header
LB: loop body
LE: loop exit
PB: predicated region body
PF: predicated region fallthrough
CT: control target
= control target key end

     0   :  { %9 = vsyncpa [#allocation7], 0  ;;  %s396_s15 = smov [#allocation6]   ;;  %s518_s0 = inlined_call_operand.vmem [shape: f32[16,32], index: 0, kind: input, shape index: {}]   ;;  %s519_s1 = inlined_call_operand.hbm [shape: f32[32,256], index: 1, kind: input, shape index: {}]   ;;  %s520_s2 = inlined_call_operand.vmem [shape: s32[16,1], index: 2, kind: input, shape index: {}]   ;;  %s521_s3 = inlined_call_operand.vmem [shape: s32[1,256], index: 3, kind: input, shape index: {}]   ;;  %s522_s4 = inlined_call_operand.vmem [shape: f32[16,1], index: 4, kind: output, shape index: {}]  }
   0x1   :  { %s17_s16 = sshll.u32 %s396_s15, 4  ;;  %s372_s19 = scalar_lea.hbm %s519_s1, 1024  ;;  %s18_s16 = int_to_ptr.vmem [resolvable:$true] %s17_s16 }
   0x2   :  { %p373_p0 = scmp.ne.s32.totalorder %s519_s1, %s372_s19  ;;  %p376_p1 = scmp.lt.u32.totalorder %s372_s19, %s519_s1 }
   0x4   :  { %p378_p2 = pnand %p376_p1, %p373_p0 }
   0x6   :  { %381 = shalt.err (!%p378_p2)
}
   0x7   :  { %s382_s24 = scalar_lea.vmem %s18_s16, 1024  ;;  %p387_p4 = scmp.lt.s32.totalorder %s18_s16, %s18_s16 }
   0x8   :  { %p383_p3 = scmp.ne.s32.totalorder %s18_s16, %s382_s24  ;;  %p388_p5 = scmp.lt.s32.totalorder %s382_s24, %s382_s24 }
   0xa   :  { %p389_p6 = por %p388_p5, %p387_p4 }
   0xc   :  { %p390_p7 = pnand %p389_p6, %p383_p3 }
   0xe   :  { %393 = shalt.err (!%p390_p7)
}
   0xf   :  { %s397_s25 = smov 256   ;;  %s398_s26 = smov 16  }
  0x10   :  { %23 = dma.hbm_to_vmem [thread:$0]  %s519_s1, 1024, %s18_s16, [#allocation7], %s397_s25, %s397_s25, %s398_s26  }
  0x11   :  { %394 = dma.done.wait [#allocation7], 1024  }
  0x12   :  { %395 = vsyncadd [#allocation7], 4294966272  ;;  %v399_v0 = vmov 0.0   ;;  %v47_v1 = vld [vmem:[#allocation6 + $0x8] sm:$0xff]  ;;  %v49_v2 = vld [vmem:[#allocation6 + $0x18] sm:$0xff]  ;;  %vm54_vm0 = vcmask 261120   ;;  %v138_v17 = vlaneseq }
  0x13   :  { %125 = vmatprep.mubr.f32.mxu0 %v399_v0  ;;  %131 = vmatprep.mubr.f32.mxu1 %v399_v0  ;;  %v46_v3 = vld [vmem:[#allocation6] sm:$0xff]  ;;  %v332_v4 = vpack.c.bf16 %v49_v2, %v47_v1  ;;  %v48_v5 = vld [vmem:[#allocation6 + $0x10] sm:$0xff]  ;;  %v51_v6 = vld [vmem:[#allocation6 + $0x28] sm:$0xff]  ;;  %v400_v15 = vmov 0   ;;  %vm35_vm1 = vcmask 7168   ;;  %v401_v16 = vmov -inf  }
  0x14   :  { %v53_v7 = vld [vmem:[#allocation6 + $0x38] sm:$0xff]  ;;  %v334_v8 = vpack.c.bf16 %v48_v5, %v46_v3  ;;  %v50_v10 = vld [vmem:[#allocation6 + $0x20] sm:$0xff]  ;;  %v52_v11 = vld [vmem:[#allocation6 + $0x30] sm:$0xff]  ;;  %351 = vset.pattern.permute.xlu0 %v400_v15  ;;  %350 = vset.pattern.permute.xlu1 %v400_v15  ;;  %36 = vst.msk [vmem:[#allocation2] sm:$0xff] %vm35_vm1, %v401_v16  ;;  %v139_v18 = vshrl.u32 %v138_v17, 7  ;;  %v146_v20 = vand.u32 127, %v138_v17 }
  0x15   :  { %v336_v9 = vpack.c.bf16 %v53_v7, %v51_v6  ;;  %333 = vmatprep.subr.bf16.mxu0 %v332_v4  ;;  %340 = vmatprep.subr.bf16.mxu1 %v332_v4  ;;  %v338_v12 = vpack.c.bf16 %v52_v11, %v50_v10  ;;  %v44_v13 = vld [vmem:[%s518_s0] sm:$0xff]  ;;  %v45_v14 = vld [vmem:[%s518_s0 + $0x8] sm:$0xff]  ;;  %37 = vst.msk [vmem:[#allocation2 + $0x8] sm:$0xff] %vm35_vm1, %v401_v16  ;;  %38 = vst.msk [vmem:[#allocation3] sm:$0xff] %vm35_vm1, %v399_v0 }
  0x16   :  { %335 = vmatpush1.bf16.msra.mxu0 %v334_v8  ;;  %342 = vmatpush1.bf16.msra.mxu1 %v334_v8  ;;  %39 = vst.msk [vmem:[#allocation3 + $0x8] sm:$0xff] %vm35_vm1, %v399_v0  ;;  %40 = vst.msk [vmem:[#allocation4] sm:$0xff] %vm35_vm1, %v399_v0  ;;  %v140_v19 = vadd.s32 8, %v139_v18  ;;  %vm152_vm3 = vcmp.lt.s32.totalorder %v146_v20, 16  ;;  %v162_v29 = vld [vmem:[%s520_s2] sm:$0xff]  ;;  %v173_v37 = vsub.s32 0, %v139_v18  ;;  %vm154_vm5 = vcmp.ne.s32.totalorder %v139_v18, %v146_v20 }
  0x17   :  { %337 = vmatprep.subr.bf16.mxu0 %v336_v9  ;;  %341 = vmatprep.subr.bf16.mxu1 %v336_v9  ;;  %41 = vst.msk [vmem:[#allocation4 + $0x8] sm:$0xff] %vm35_vm1, %v399_v0  ;;  %42 = vst.msk [vmem:[#allocation5] sm:$0xff] %vm35_vm1, %v399_v0  ;;  %v164_v38 = vld [vmem:[%s521_s3] sm:$0x3]  ;;  %v163_v40 = vld [vmem:[%s520_s2 + $0x8] sm:$0xff] }
  0x18   :  { %43 = vst.msk [vmem:[#allocation5 + $0x8] sm:$0xff] %vm35_vm1, %v399_v0  ;;  %vm156_vm2 = vcmp.ne.s32.totalorder %v140_v19, %v146_v20  ;;  %v174_v41 = vrot.slane %v164_v38, %v173_v37  ;;  %vm158_vm7 = vmand %vm154_vm5, %vm152_vm3 }
  0x19   :  { %vm462_vm4 = vmand %vm156_vm2, %vm152_vm3 }
  0x1a   :  { %339 = vmatpush1.bf16.msra.mxu0 %v338_v12  ;;  %343 = vmatpush1.bf16.msra.mxu1 %v338_v12 }
  0x1b   :  { %v203_v30 = vld [vmem:[#allocation2] sm:$0xff] }
  0x1c   :  { %v204_v33 = vld [vmem:[#allocation2 + $0x8] sm:$0xff]  ;;  %v239_v9 = vld [vmem:[#allocation3] sm:$0xff] }
  0x1d   :  { %328 = vmatmul.mubr.msk.f32.vlgmr.msra.gmra.mrb[0].mxu0 %vm54_vm0, %v44_v13  ;;  %329 = vmatmul.mubr.msk.f32.vlgmr.msra.gmra.mrb[0].mxu1 %vm54_vm0, %v45_v14  ;;  %v264_v4 = vld [vmem:[#allocation4] sm:$0xff]  ;;  %v240_v13 = vld [vmem:[#allocation3 + $0x8] sm:$0xff] }
  0x1e   :  { %v265_v17 = vld [vmem:[#allocation4 + $0x8] sm:$0xff] }
  0xf0   :  { %v466_v22 = vpop.f32.mrb[0].mxu0  ;;  %v468_v23 = vpop.f32.mrb[0].mxu1 }
  0xf1   :  { %v129_v24 = vpop.f32.mrb[1].mxu0  ;;  %v193_v25 = vsel %vm152_vm3, %v466_v22, -inf  ;;  %v135_v26 = vpop.f32.mrb[1].mxu1  ;;  %v209_v27 = vsel %vm462_vm4, %v468_v23, -inf  ;;  %v195_v28 = vsel %vm152_vm3, %v468_v23, -inf  ;;  %v207_v46 = vsel %vm158_vm7, %v466_v22, -inf }
  0xf2   :  { %198 = vmax.xlane.f32.xlu0 %v193_v25 }
  0xf6   :  { %201 = vmax.xlane.f32.xlu0 %v195_v28 }
 0x10c   :  { %166 = vperm.xlu0 %351, %v162_v29  }
 0x17f   :  { %v199_v31 = vpop.xlane.xlu0 %198 }
 0x180   :  { %v205_v32 = vmax.f32 %v203_v30, %v199_v31 }
 0x182   :  { %v233_v34 = vsub.f32 %v203_v30, %v205_v32  ;;  %254 = vst.msk [vmem:[#allocation2] sm:$0xff] %vm35_vm1, %v205_v32  ;;  %213 = vperm.xlu1 %350, %v205_v32  }
 0x183   :  { %v202_v35 = vpop.xlane.xlu0 %201 }
 0x184   :  { %v206_v36 = vmax.f32 %v204_v33, %v202_v35  ;;  %v235_v6 = vmul.f32 1.442695, %v233_v34 }
 0x186   :  { %v234_v39 = vsub.f32 %v204_v33, %v206_v36  ;;  %255 = vst.msk [vmem:[#allocation2 + $0x8] sm:$0xff] %vm35_vm1, %v206_v36  ;;  %218 = vperm.xlu1 %350, %v206_v36  }
 0x188   :  { %v237_v7 = vmul.f32 1.442695, %v234_v39 }
 0x189   :  { %v295_v34 = vld [vmem:[#allocation2] sm:$0xff] }
 0x18a   :  { %169 = vperm.xlu1 %350, %v163_v40  }
 0x18b   :  { %v167_v42 = vpop.permute.xlu0 %166 }
 0x18c   :  { %vm179_vm6 = vcmp.eq.s32.totalorder %v167_v42, %v174_v41 }
 0x18d   :  { %vm489_vm8 = vmand %vm179_vm6, %vm158_vm7  ;;  %v296_v40 = vld [vmem:[#allocation2 + $0x8] sm:$0xff] }
 0x18e   :  { %v278_v44 = vsel %vm489_vm8, %v466_v22, 0.0  ;;  %v330_v45 = vsel %vm489_vm8, 1.0, %v399_v0  ;;  %v276_v22 = vld [vmem:[#allocation5] sm:$0xff] }
 0x18f   :  { %267 = vadd.xlane.f32.xlu0 %v330_v45 }
 0x201   :  { %v214_v47 = vpop.permute.xlu1 %213 }
 0x202   :  { %v221_v48 = vsub.f32 %v207_v46, %v214_v47  ;;  %v222_v49 = vsub.f32 -inf, %v214_v47 }
 0x204   :  { %v225_v50 = vmul.f32 1.442695, %v221_v48  ;;  %v227_v51 = vmul.f32 1.442695, %v222_v49 }
 0x205   :  { %v219_v52 = vpop.permute.xlu1 %218 }
 0x206   :  { %352 = vpow2.f32 %v225_v50  ;;  %v223_v53 = vsub.f32 %v209_v27, %v219_v52  ;;  %v224_v54 = vsub.f32 -inf, %v219_v52  ;;  %v277_v27 = vld [vmem:[#allocation5 + $0x8] sm:$0xff] }
 0x207   :  { %354 = vpow2.f32 %v227_v51 }
 0x208   :  { %v229_v55 = vmul.f32 1.442695, %v223_v53  ;;  %v231_v56 = vmul.f32 1.442695, %v224_v54 }
 0x209   :  { %v170_v57 = vpop.permute.xlu1 %169 }
 0x20a   :  { %356 = vpow2.f32 %v229_v55  ;;  %vm181_vm9 = vcmp.eq.s32.totalorder %v170_v57, %v174_v41 }
 0x20b   :  { %358 = vpow2.f32 %v231_v56  ;;  %vm185_vm10 = vmand %vm181_vm9, %vm462_vm4 }
 0x20c   :  { %v280_v58 = vsel %vm185_vm10, %v468_v23, 0.0  ;;  %v331_v2 = vsel %vm185_vm10, 1.0, %v399_v0  ;;  %360 = vpow2.f32 %v235_v6 }
 0x20d   :  { %362 = vpow2.f32 %v237_v7 }
 0x210   :  { %v353_v59 = vpop.eup %352 }
 0x211   :  { %v355_v60 = vpop.eup %354 }
 0x212   :  { %v243_v61 = vadd.f32 %v355_v60, %v353_v59 }
 0x214   :  { %v357_v62 = vpop.eup %356  ;;  %244 = vadd.xlane.f32.xlu1 %v243_v61 }
 0x215   :  { %v359_v63 = vpop.eup %358 }
 0x216   :  { %v246_v1 = vadd.f32 %v359_v63, %v357_v62  ;;  %v361_v8 = vpop.eup %360 }
 0x217   :  { %v241_v10 = vmul.f32 %v361_v8, %v239_v9  ;;  %v363_v11 = vpop.eup %362 }
 0x218   :  { %247 = vadd.xlane.f32.xlu1 %v246_v1  ;;  %v242_v0 = vmul.f32 %v363_v11, %v240_v13 }
 0x21c   :  { %270 = vadd.xlane.f32.xlu1 %v331_v2  ;;  %v268_v3 = vpop.xlane.xlu0 %267 }
 0x21d   :  { %v272_v5 = vadd.f32 %v268_v3, %v264_v4 }
 0x21f   :  { %274 = vst.msk [vmem:[#allocation4] sm:$0xff] %vm35_vm1, %v272_v5 }
 0x220   :  { %283 = vadd.xlane.f32.xlu1 %v278_v44 }
 0x224   :  { %286 = vadd.xlane.f32.xlu1 %v280_v58 }
 0x226   :  { %v307_v21 = vld [vmem:[#allocation4] sm:$0xff] }
 0x227   :  { %v313_v24 = vadd.f32 1e-07, %v307_v21 }
 0x2a1   :  { %v245_v12 = vpop.xlane.xlu1 %244 }
 0x2a2   :  { %v249_v14 = vadd.f32 %v245_v12, %v241_v10 }
 0x2a4   :  { %252 = vst.msk [vmem:[#allocation3] sm:$0xff] %vm35_vm1, %v249_v14 }
 0x2a5   :  { %v248_v15 = vpop.xlane.xlu1 %247 }
 0x2a6   :  { %v250_v16 = vadd.f32 %v248_v15, %v242_v0 }
 0x2a8   :  { %253 = vst.msk [vmem:[#allocation3 + $0x8] sm:$0xff] %vm35_vm1, %v250_v16 }
 0x2a9   :  { %v271_v18 = vpop.xlane.xlu1 %270 }
 0x2aa   :  { %v273_v19 = vadd.f32 %v271_v18, %v265_v17 }
 0x2ab   :  { %v297_v20 = vld [vmem:[#allocation3] sm:$0xff] }
 0x2ac   :  { %364 = vlog2.f32 %v297_v20  ;;  %275 = vst.msk [vmem:[#allocation4 + $0x8] sm:$0xff] %vm35_vm1, %v273_v19 }
 0x2ad   :  { %v284_v23 = vpop.xlane.xlu1 %283 }
 0x2ae   :  { %v288_v25 = vadd.f32 %v284_v23, %v276_v22 }
 0x2af   :  { %v298_v26 = vld [vmem:[#allocation3 + $0x8] sm:$0xff] }
 0x2b0   :  { %366 = vlog2.f32 %v298_v26  ;;  %290 = vst.msk [vmem:[#allocation5] sm:$0xff] %vm35_vm1, %v288_v25 }
 0x2b1   :  { %v287_v28 = vpop.xlane.xlu1 %286  ;;  %368 = vrcp.f32 %v313_v24 }
 0x2b2   :  { %v289_v29 = vadd.f32 %v287_v28, %v277_v27 }
 0x2b3   :  { %v308_v30 = vld [vmem:[#allocation4 + $0x8] sm:$0xff] }
 0x2b4   :  { %v314_v31 = vadd.f32 1e-07, %v308_v30  ;;  %291 = vst.msk [vmem:[#allocation5 + $0x8] sm:$0xff] %vm35_vm1, %v289_v29 }
 0x2b6   :  { %v365_v32 = vpop.eup %364  ;;  %370 = vrcp.f32 %v314_v31 }
 0x2b7   :  { %v300_v33 = vmul.f32 0.6931472, %v365_v32  ;;  %v305_v41 = vld [vmem:[#allocation5] sm:$0xff] }
 0x2b9   :  { %v303_v35 = vadd.f32 %v300_v33, %v295_v34 }
 0x2ba   :  { %v367_v36 = vpop.eup %366 }
 0x2bb   :  { %v309_v37 = vmul.f32 %v307_v21, %v303_v35  ;;  %v302_v38 = vmul.f32 0.6931472, %v367_v36  ;;  %v369_v39 = vpop.eup %368  ;;  %v306_v46 = vld [vmem:[#allocation5 + $0x8] sm:$0xff] }
 0x2bd   :  { %v304_v42 = vadd.f32 %v302_v38, %v296_v40  ;;  %v311_v43 = vsub.f32 %v305_v41, %v309_v37 }
 0x2bf   :  { %v310_v44 = vmul.f32 %v308_v30, %v304_v42  ;;  %v316_v45 = vmul.f32 %v369_v39, %v311_v43 }
 0x2c0   :  { %v371_v49 = vpop.eup %370 }
 0x2c1   :  { %v319_v47 = vmul.f32 -1.0, %v316_v45  ;;  %v312_v48 = vsub.f32 %v306_v46, %v310_v44 }
 0x2c3   :  { %321 = vst.msk [vmem:[%s522_s4] sm:$0xff] %vm35_vm1, %v319_v47  ;;  %v318_v50 = vmul.f32 %v371_v49, %v312_v48 }
 0x2c5   :  { %v320_v51 = vmul.f32 -1.0, %v318_v50 }
 0x2c7   :  { %322 = vst.msk [vmem:[%s522_s4 + $0x8] sm:$0xff] %vm35_vm1, %v320_v51 }
 0x2c8   :  { %327 = vsyncpa [#allocation7], 1 }

</bundles_post_ra>
